<compile_context>
chip_gen: v7x
topology: tpu7x:2x2x1
jax: 0.10.0
libtpu: 0.0.40
codegen_flags: <defaults>
</compile_context>

<pallas_src>
import functools

import jax
import jax.numpy as jnp
from jax.experimental import pallas as pl
from jax.experimental.pallas import tpu as pltpu

_LANES = 128
_MAX_DMAS = 8                 # outstanding HBM->HBM DMAs for large copies
_MIN_CHUNK_BYTES = 1 << 20    # keep each DMA >= 1 MiB so issue latency is noise


def _hbm_copy_kernel(x_hbm, o_hbm, sems, *, chunks, total_rows):
    """Direct HBM->HBM memcpy: issue all DMAs, then wait on all of them."""
    started = []
    for k, (row0, nrows) in enumerate(chunks):
        if nrows == total_rows:
            src, dst = x_hbm, o_hbm              # whole-ref copy, no slicing
        else:
            src = x_hbm.at[pl.ds(row0, nrows)]
            dst = o_hbm.at[pl.ds(row0, nrows)]
        cp = pltpu.make_async_copy(src, dst, sems.at[k])
        cp.start()
        started.append(cp)
    for cp in started:
        cp.wait()


def _chunk_rows(rows: int, n_chunks: int):
    base, rem = divmod(rows, n_chunks)
    chunks, row0 = [], 0
    for k in range(n_chunks):
        nrows = base + (1 if k < rem else 0)
        if nrows == 0:
            continue
        chunks.append((row0, nrows))
        row0 += nrows
    return tuple(chunks)


def identity_pallas(x: jax.Array, *, force_copy: bool = False) -> jax.Array:
    """nn.Identity forward.

    Default: return x unchanged (the fastest correct implementation: zero HBM
    traffic, zero launch overhead).  With force_copy=True, materialize a fresh
    copy of x via an explicit Pallas direct HBM->HBM DMA memcpy kernel.
    """
    if not force_copy:
        return x

    orig_shape = x.shape
    n = x.size
    if n == 0:
        return x  # nothing to copy

    itemsize = jnp.dtype(x.dtype).itemsize
    flat = x.reshape(-1)  # contiguous row-major: metadata-only, no HBM traffic

    if n % _LANES == 0:
        # Lane-aligned: view as (rows, 128) and split the copy across up to
        # _MAX_DMAS row-contiguous, concurrently outstanding DMAs.
        arr = flat.reshape(n // _LANES, _LANES)
        rows = arr.shape[0]
        total_bytes = n * itemsize
        n_chunks = int(max(1, min(_MAX_DMAS, total_bytes // _MIN_CHUNK_BYTES, rows)))
    else:
        # Ragged length: single whole-array DMA (no pad, no slice -> 1x traffic).
        arr = flat
        rows = arr.shape[0]
        n_chunks = 1

    chunks = _chunk_rows(rows, n_chunks)
    kernel = functools.partial(_hbm_copy_kernel, chunks=chunks, total_rows=rows)

    out = pl.pallas_call(
        kernel,
        out_shape=jax.ShapeDtypeStruct(arr.shape, arr.dtype),
        in_specs=[pl.BlockSpec(memory_space=pl.ANY)],
        out_specs=pl.BlockSpec(memory_space=pl.ANY),
        scratch_shapes=[pltpu.SemaphoreType.DMA((len(chunks),))],
    )(arr)

    return out.reshape(orig_shape)


if __name__ == "__main__":
    key = jax.random.PRNGKey(0)

    identity = identity_pallas                                    # default: return x
    identity_copy = jax.jit(functools.partial(identity_pallas, force_copy=True))

    # 1) Default nn.Identity path: zero-copy passthrough.
    x = jax.random.normal(key, (2, 4, 16, 16), dtype=jnp.float32)
    y = identity(x)
    jax.block_until_ready(y)
    assert y.shape == x.shape and y.dtype == x.dtype
    assert bool(jnp.all(y == x))

    # 2) Explicit Pallas copy kernel, lane-aligned shape (2*4*16*16 = 2048 elems).
    y_copy = identity_copy(x)
    jax.block_until_ready(y_copy)
    assert y_copy.shape == x.shape and y_copy.dtype == x.dtype
    assert bool(jnp.all(y_copy == x))

    # 3) Ragged shape (3*5*7 = 105, not a multiple of 128): single whole-array DMA.
    x_rag = jax.random.normal(jax.random.PRNGKey(1), (3, 5, 7), dtype=jnp.float32)
    y_rag = identity_copy(x_rag)
    jax.block_until_ready(y_rag)
    assert y_rag.shape == x_rag.shape and y_rag.dtype == x_rag.dtype
    assert bool(jnp.all(y_rag == x_rag))

    # 4) 4 MiB input to exercise the multi-DMA (4 overlapped copies) path.
    x_big = jax.random.normal(jax.random.PRNGKey(2), (4, 256, 1024), dtype=jnp.float32)
    y_big = identity_copy(x_big)
    jax.block_until_ready(y_big)
    assert y_big.shape == x_big.shape and y_big.dtype == x_big.dtype
    assert bool(jnp.all(y_big == x_big))

    print("KERNEL_OK")
</pallas_src>

<mosaic_0001>
module attributes {stable_mosaic.version = 11 : i64} {
  func.func @_hbm_copy_kernel(%arg0: memref<16x128xf32, #tpu.memory_space<any>>, %arg1: memref<16x128xf32, #tpu.memory_space<any>>, %arg2: memref<1x!tpu.dma_semaphore, #tpu.memory_space<semaphore_mem>>) attributes {dimension_semantics = [], scalar_prefetch = 0 : i64, scratch_operands = 1 : i64, tpu.core_type = #tpu.core_type<tc>} {
    %c0_i32 = arith.constant 0 : i32
    %0 = tpu.memref_slice %arg2[%c0_i32] : memref<1x!tpu.dma_semaphore, #tpu.memory_space<semaphore_mem>> -> memref<1x!tpu.dma_semaphore, #tpu.memory_space<semaphore_mem>>
    %1 = tpu.memref_squeeze %0 : memref<1x!tpu.dma_semaphore, #tpu.memory_space<semaphore_mem>> -> memref<!tpu.dma_semaphore, #tpu.memory_space<semaphore_mem>>
    tpu.enqueue_dma source(%arg0 : memref<16x128xf32, #tpu.memory_space<any>>) target(%arg1 : memref<16x128xf32, #tpu.memory_space<any>>) target_semaphore(%1 : memref<!tpu.dma_semaphore, #tpu.memory_space<semaphore_mem>>)
    %c0_i32_0 = arith.constant 0 : i32
    %2 = tpu.memref_slice %arg2[%c0_i32_0] : memref<1x!tpu.dma_semaphore, #tpu.memory_space<semaphore_mem>> -> memref<1x!tpu.dma_semaphore, #tpu.memory_space<semaphore_mem>>
    %3 = tpu.memref_squeeze %2 : memref<1x!tpu.dma_semaphore, #tpu.memory_space<semaphore_mem>> -> memref<!tpu.dma_semaphore, #tpu.memory_space<semaphore_mem>>
    tpu.wait_dma2 semaphore(%3 : memref<!tpu.dma_semaphore, #tpu.memory_space<semaphore_mem>>) src(%arg0 : memref<16x128xf32, #tpu.memory_space<any>>) dst(%arg1 : memref<16x128xf32, #tpu.memory_space<any>>)
    return
  }
}

</mosaic_0001>

<bundles_post_ra>
// kernel: identity_pallas.1
= control target key start
LH: loop header
LB: loop body
LE: loop exit
PB: predicated region body
PF: predicated region fallthrough
CT: control target
= control target key end

     0   :  { %s92_s0 = inlined_call_operand.vmem [shape: f32[16,128], index: 0, kind: input, shape index: {}]   ;;  %s93_s1 = inlined_call_operand.vmem [shape: f32[16,128], index: 1, kind: output, shape index: {}]  }
   0x1   :  { %v38_v0 = vld [vmem:[%s92_s0] sm:$0xff]  ;;  %v40_v1 = vld [vmem:[%s92_s0 + $0x8] sm:$0xff] }
   0x2   :  { %39 = vst [vmem:[%s93_s1] sm:$0xff] %v38_v0  ;;  %41 = vst [vmem:[%s93_s1 + $0x8] sm:$0xff] %v40_v1 }
   0x3   :  { %49 = vsyncadd [#allocation2], 256 }
   0x4   :  { %68 = dma.done.wait [#allocation2], 256 }
   0x5   :  { %69 = vsyncadd [#allocation2], 4294967040 }
   0x6   :  { %53 = vsyncmov [#allocation2] }
   0x9   :  { %s54_s14 = vpop.sfrf %53 }
   0xa   :  { %p67_p0 = scmp.ne.s32.totalorder %s54_s14, 0 }
   0xc   :  { %58 = shalt.err (%p67_p0)  }

</bundles_post_ra>
